<compile_context>
chip_gen: v7x
topology: tpu7x:2x2x1
jax: 0.10.0
libtpu: 0.0.40
codegen_flags: <defaults>
</compile_context>

<pallas_src>
import functools

import jax
import jax.numpy as jnp
from jax.experimental import pallas as pl
from jax.experimental.pallas import tpu as pltpu

_LANE = 128


def _dice_kernel(pred_ref, target_ref, inter_ref, psum_ref, tsum_ref,
                 *, s_tile, s_true, needs_mask):
    j = pl.program_id(1)

    @pl.when(j == 0)
    def _init():
        inter_ref[...] = jnp.zeros_like(inter_ref)
        psum_ref[...] = jnp.zeros_like(psum_ref)
        tsum_ref[...] = jnp.zeros_like(tsum_ref)

    # Cast in-kernel: inputs are DMA'd in their native dtype (so a bool/int8
    # target costs 1 byte/elem of HBM traffic, not 4).
    x = pred_ref[...].astype(jnp.float32)        # (1, s_tile, 128)
    t = target_ref[...].astype(jnp.float32)      # (1, s_tile, 128)

    # sigmoid(x) = 0.5 * tanh(0.5 * x) + 0.5 : one EUP op (tanh) plus two cheap
    # VPU ops instead of exp + reciprocal.
    p = 0.5 * jnp.tanh(0.5 * x) + 0.5

    def _accumulate(pv, tv):
        # Full-sublane accumulation: (1, s_tile, 128) -> (1, s_tile//8, 8, 128)
        # is a vreg-granular view; the axis=1 sums are pure VPU adds into the
        # resident (1, 8, 128) output accumulators.
        pr = pv.reshape(1, s_tile // 8, 8, _LANE)
        tr = tv.reshape(1, s_tile // 8, 8, _LANE)
        inter_ref[...] += jnp.sum(pr * tr, axis=1)
        psum_ref[...] += jnp.sum(pr, axis=1)
        tsum_ref[...] += jnp.sum(tr, axis=1)

    if needs_mask:
        last = pl.num_programs(1) - 1

        @pl.when(j != last)
        def _full_tile():
            _accumulate(p, t)

        @pl.when(j == last)
        def _masked_tail_tile():
            # Only the last tile can contain rows past the true S; a row-only
            # mask zeroes the out-of-range (Pallas-padded) rows.
            row = j * s_tile + jax.lax.broadcasted_iota(jnp.int32, p.shape, 1)
            valid = row < s_true
            _accumulate(jnp.where(valid, p, 0.0), jnp.where(valid, t, 0.0))
    else:
        _accumulate(p, t)


def _dice_loss_ref(pred, target, smooth=1.0):
    """Pure-JAX reference mirroring the PyTorch forward."""
    B = pred.shape[0]
    p = jax.nn.sigmoid(pred.astype(jnp.float32)).reshape(B, -1)
    t = target.astype(jnp.float32).reshape(B, -1)
    intersection = jnp.sum(p * t, axis=1)
    union = jnp.sum(p, axis=1) + jnp.sum(t, axis=1)
    dice = (2.0 * intersection + smooth) / (union + smooth)
    return 1.0 - jnp.mean(dice)


def dice_loss(pred, target, smooth=1.0, *,
              vmem_budget_bytes=8 * 1024 * 1024,
              min_pallas_elements=1 << 20):
    """Pallas implementation of DiceLoss.forward(pred, target).

    `target` may be passed in a narrow dtype (bool / int8 / bf16); it is cast
    to f32 inside the kernel, which cuts its HBM traffic on this
    bandwidth-bound kernel.
    """
    smooth = float(smooth)
    B = pred.shape[0]
    pred2 = pred.reshape(B, -1)
    target2 = target.reshape(B, -1)
    N = pred2.shape[1]

    S = N // _LANE            # full 128-lane rows per batch covered by the kernel
    n_main = S * _LANE

    # Small problems (or fewer than 8 dense rows): XLA's fused elementwise +
    # reduce is as fast with zero Pallas launch overhead.
    if S < 8 or B * N < min_pallas_elements:
        return _dice_loss_ref(pred, target, smooth)

    # Zero-copy reshape of the lane-aligned prefix (no jnp.pad).
    # TODO(synk): when N % 128 != 0 the prefix slice+reshape still costs one
    # HBM copy; a fully copy-free unaligned path would need a (B, N)-native
    # block layout.
    pred3 = pred2[:, :n_main].reshape(B, S, _LANE)
    target3 = target2[:, :n_main].reshape(B, S, _LANE)

    # Largest multiple-of-8 S-tile whose double-buffered (both inputs, native
    # dtypes) footprint fits the VMEM budget; capped at the largest
    # multiple-of-8 that does not exceed S.
    itemsize = jnp.dtype(pred3.dtype).itemsize + jnp.dtype(target3.dtype).itemsize
    bytes_per_row = 2 * _LANE * itemsize          # 2 pipeline buffers per input
    s_tile_cap = (S // 8) * 8
    s_tile = (vmem_budget_bytes // bytes_per_row) // 8 * 8
    s_tile = max(8, min(s_tile, s_tile_cap))

    # Prefer a tile that divides S exactly (no masked partial tile); bounded
    # downward search so the tile never shrinks below half the budgeted size.
    if S % s_tile != 0 and S % 8 == 0:
        for cand in range(s_tile, max(8, s_tile // 2) - 1, -8):
            if S % cand == 0:
                s_tile = cand
                break

    num_tiles = pl.cdiv(S, s_tile)
    needs_mask = (num_tiles * s_tile) != S

    kernel = functools.partial(_dice_kernel, s_tile=s_tile, s_true=S,
                               needs_mask=needs_mask)

    acc_shape = jax.ShapeDtypeStruct((B, 8, _LANE), jnp.float32)
    acc_spec = pl.BlockSpec((1, 8, _LANE), lambda b, j: (b, 0, 0))

    cost = pl.CostEstimate(
        flops=6 * B * n_main,
        transcendentals=B * n_main,
        bytes_accessed=int(pred3.size * jnp.dtype(pred3.dtype).itemsize
                           + target3.size * jnp.dtype(target3.dtype).itemsize
                           + 3 * B * 8 * _LANE * 4),
    )

    inter_p, psum_p, tsum_p = pl.pallas_call(
        kernel,
        out_shape=(acc_shape, acc_shape, acc_shape),
        grid_spec=pltpu.PrefetchScalarGridSpec(
            num_scalar_prefetch=0,
            grid=(B, num_tiles),
            in_specs=[
                pl.BlockSpec((1, s_tile, _LANE), lambda b, j: (b, j, 0)),
                pl.BlockSpec((1, s_tile, _LANE), lambda b, j: (b, j, 0)),
            ],
            out_specs=(acc_spec, acc_spec, acc_spec),
        ),
        compiler_params=pltpu.CompilerParams(
            dimension_semantics=("parallel", "arbitrary"),
            vmem_limit_bytes=32 * 1024 * 1024,
        ),
        cost_estimate=cost,
    )(pred3, target3)

    # Epilogue (fused by XLA): cross-lane reduce, lane tail, dice, mean.
    intersection = jnp.sum(inter_p, axis=(1, 2))
    pred_sum = jnp.sum(psum_p, axis=(1, 2))
    targ_sum = jnp.sum(tsum_p, axis=(1, 2))

    if n_main != N:
        p_tail = jax.nn.sigmoid(pred2[:, n_main:].astype(jnp.float32))
        t_tail = target2[:, n_main:].astype(jnp.float32)
        intersection = intersection + jnp.sum(p_tail * t_tail, axis=1)
        pred_sum = pred_sum + jnp.sum(p_tail, axis=1)
        targ_sum = targ_sum + jnp.sum(t_tail, axis=1)

    dice = (2.0 * intersection + smooth) / (pred_sum + targ_sum + smooth)
    return 1.0 - jnp.mean(dice)


if __name__ == "__main__":
    key = jax.random.PRNGKey(0)

    def _make(shape, k):
        kp, kt = jax.random.split(k)
        p = jax.random.normal(kp, shape, dtype=jnp.float32)
        t = (jax.random.uniform(kt, shape) > 0.5).astype(jnp.float32)
        return p, t

    k1, k2, k3 = jax.random.split(key, 3)

    # 1) Lane-aligned case (N = 4*16*16 = 1024): zero-copy path, single tile.
    pred, target = _make((2, 4, 16, 16), k1)
    loss = jax.block_until_ready(
        dice_loss(pred, target, smooth=1.0, min_pallas_elements=0))
    ref = _dice_loss_ref(pred, target, smooth=1.0)
    assert jnp.allclose(loss, ref, atol=1e-4, rtol=1e-4), (loss, ref)

    # 2) Lane-tail case (N = 4*17*16 = 1088 -> 64-element tail per batch,
    #    combined in the wrapper, no pad).
    pred, target = _make((2, 4, 17, 16), k2)
    loss = jax.block_until_ready(
        dice_loss(pred, target, smooth=1.0, min_pallas_elements=0))
    ref = _dice_loss_ref(pred, target, smooth=1.0)
    assert jnp.allclose(loss, ref, atol=1e-4, rtol=1e-4), (loss, ref)

    # 3) Partial last S-tile (S = 104, forced s_tile = 48 -> gated row mask on
    #    the final tile only), verifying the padded-block + mask path on HW.
    pred, target = _make((2, 13, 32, 32), k3)
    loss = jax.block_until_ready(
        dice_loss(pred, target, smooth=1.0, min_pallas_elements=0,
                  vmem_budget_bytes=100_000))
    ref = _dice_loss_ref(pred, target, smooth=1.0)
    assert jnp.allclose(loss, ref, atol=1e-4, rtol=1e-4), (loss, ref)

    print("KERNEL_OK")
</pallas_src>

<mosaic_0001>
module attributes {stable_mosaic.version = 11 : i64} {
  func.func @_dice_kernel(%arg0: i32, %arg1: i32, %arg2: memref<1x8x128xf32, #tpu.memory_space<vmem>>, %arg3: memref<1x8x128xf32, #tpu.memory_space<vmem>>, %arg4: memref<1x8x128xf32, #tpu.memory_space<vmem>>, %arg5: memref<1x8x128xf32, #tpu.memory_space<vmem>>, %arg6: memref<1x8x128xf32, #tpu.memory_space<vmem>>) attributes {dimension_semantics = [#tpu.dimension_semantics<parallel>, #tpu.dimension_semantics<arbitrary>], iteration_bounds = array<i64: 2, 1>, scalar_prefetch = 0 : i64, scratch_operands = 0 : i64, tpu.core_type = #tpu.core_type<tc>, window_params = [{transform_indices = @transform_0, window_bounds = array<i64: 1, 8, 128>}, {transform_indices = @transform_1, window_bounds = array<i64: 1, 8, 128>}, {transform_indices = @transform_2, window_bounds = array<i64: 1, 8, 128>}, {transform_indices = @transform_3, window_bounds = array<i64: 1, 8, 128>}, {transform_indices = @transform_4, window_bounds = array<i64: 1, 8, 128>}]} {
    %c0_i32 = arith.constant 0 : i32
    %0 = arith.cmpi eq, %arg1, %c0_i32 : i32
    %1 = arith.extui %0 : i1 to i32
    %c0_i32_0 = arith.constant 0 : i32
    %2 = arith.cmpi ne, %1, %c0_i32_0 : i32
    scf.if %2 {
      %cst_29 = arith.constant 0.000000e+00 : f32
      %27 = vector.broadcast %cst_29 : f32 to vector<1x8x128xf32>
      %c0_30 = arith.constant 0 : index
      %c0_31 = arith.constant 0 : index
      %c0_32 = arith.constant 0 : index
      %28 = vector.load %arg4[%c0_30, %c0_31, %c0_32] : memref<1x8x128xf32, #tpu.memory_space<vmem>>, vector<1x8x128xf32>
      tpu.vector_store %arg4[%c0_30, %c0_31, %c0_32], %27 {strides = array<i32>} : memref<1x8x128xf32, #tpu.memory_space<vmem>>, vector<1x8x128xf32>,
      %cst_33 = arith.constant 0.000000e+00 : f32
      %29 = vector.broadcast %cst_33 : f32 to vector<1x8x128xf32>
      %c0_34 = arith.constant 0 : index
      %c0_35 = arith.constant 0 : index
      %c0_36 = arith.constant 0 : index
      %30 = vector.load %arg5[%c0_34, %c0_35, %c0_36] : memref<1x8x128xf32, #tpu.memory_space<vmem>>, vector<1x8x128xf32>
      tpu.vector_store %arg5[%c0_34, %c0_35, %c0_36], %29 {strides = array<i32>} : memref<1x8x128xf32, #tpu.memory_space<vmem>>, vector<1x8x128xf32>,
      %cst_37 = arith.constant 0.000000e+00 : f32
      %31 = vector.broadcast %cst_37 : f32 to vector<1x8x128xf32>
      %c0_38 = arith.constant 0 : index
      %c0_39 = arith.constant 0 : index
      %c0_40 = arith.constant 0 : index
      %32 = vector.load %arg6[%c0_38, %c0_39, %c0_40] : memref<1x8x128xf32, #tpu.memory_space<vmem>>, vector<1x8x128xf32>
      tpu.vector_store %arg6[%c0_38, %c0_39, %c0_40], %31 {strides = array<i32>} : memref<1x8x128xf32, #tpu.memory_space<vmem>>, vector<1x8x128xf32>,
    } else {
    }
    %c0 = arith.constant 0 : index
    %c0_1 = arith.constant 0 : index
    %c0_2 = arith.constant 0 : index
    %3 = vector.load %arg2[%c0, %c0_1, %c0_2] : memref<1x8x128xf32, #tpu.memory_space<vmem>>, vector<1x8x128xf32>
    %c0_3 = arith.constant 0 : index
    %c0_4 = arith.constant 0 : index
    %c0_5 = arith.constant 0 : index
    %4 = vector.load %arg3[%c0_3, %c0_4, %c0_5] : memref<1x8x128xf32, #tpu.memory_space<vmem>>, vector<1x8x128xf32>
    %cst = arith.constant 5.000000e-01 : f32
    %5 = vector.broadcast %cst : f32 to vector<1x8x128xf32>
    %6 = arith.mulf %5, %3 : vector<1x8x128xf32>
    %7 = math.tanh %6 : vector<1x8x128xf32>
    %cst_6 = arith.constant 5.000000e-01 : f32
    %8 = vector.broadcast %cst_6 : f32 to vector<1x8x128xf32>
    %9 = arith.mulf %8, %7 : vector<1x8x128xf32>
    %cst_7 = arith.constant 5.000000e-01 : f32
    %10 = vector.broadcast %cst_7 : f32 to vector<1x8x128xf32>
    %11 = arith.addf %9, %10 : vector<1x8x128xf32>
    %12 = vector.shape_cast %11 : vector<1x8x128xf32> to vector<1x1x8x128xf32>
    %13 = vector.shape_cast %4 : vector<1x8x128xf32> to vector<1x1x8x128xf32>
    %c0_8 = arith.constant 0 : index
    %c0_9 = arith.constant 0 : index
    %c0_10 = arith.constant 0 : index
    %14 = vector.load %arg4[%c0_8, %c0_9, %c0_10] : memref<1x8x128xf32, #tpu.memory_space<vmem>>, vector<1x8x128xf32>
    %15 = arith.mulf %12, %13 : vector<1x1x8x128xf32>
    %cst_11 = arith.constant dense<0.000000e+00> : vector<1x8x128xf32>
    %16 = vector.multi_reduction <add>, %15, %cst_11 [1] : vector<1x1x8x128xf32> to vector<1x8x128xf32>
    %17 = arith.addf %14, %16 : vector<1x8x128xf32>
    %c0_12 = arith.constant 0 : index
    %c0_13 = arith.constant 0 : index
    %c0_14 = arith.constant 0 : index
    %18 = vector.load %arg4[%c0_12, %c0_13, %c0_14] : memref<1x8x128xf32, #tpu.memory_space<vmem>>, vector<1x8x128xf32>
    tpu.vector_store %arg4[%c0_12, %c0_13, %c0_14], %17 {strides = array<i32>} : memref<1x8x128xf32, #tpu.memory_space<vmem>>, vector<1x8x128xf32>,
    %c0_15 = arith.constant 0 : index
    %c0_16 = arith.constant 0 : index
    %c0_17 = arith.constant 0 : index
    %19 = vector.load %arg5[%c0_15, %c0_16, %c0_17] : memref<1x8x128xf32, #tpu.memory_space<vmem>>, vector<1x8x128xf32>
    %cst_18 = arith.constant dense<0.000000e+00> : vector<1x8x128xf32>
    %20 = vector.multi_reduction <add>, %12, %cst_18 [1] : vector<1x1x8x128xf32> to vector<1x8x128xf32>
    %21 = arith.addf %19, %20 : vector<1x8x128xf32>
    %c0_19 = arith.constant 0 : index
    %c0_20 = arith.constant 0 : index
    %c0_21 = arith.constant 0 : index
    %22 = vector.load %arg5[%c0_19, %c0_20, %c0_21] : memref<1x8x128xf32, #tpu.memory_space<vmem>>, vector<1x8x128xf32>
    tpu.vector_store %arg5[%c0_19, %c0_20, %c0_21], %21 {strides = array<i32>} : memref<1x8x128xf32, #tpu.memory_space<vmem>>, vector<1x8x128xf32>,
    %c0_22 = arith.constant 0 : index
    %c0_23 = arith.constant 0 : index
    %c0_24 = arith.constant 0 : index
    %23 = vector.load %arg6[%c0_22, %c0_23, %c0_24] : memref<1x8x128xf32, #tpu.memory_space<vmem>>, vector<1x8x128xf32>
    %cst_25 = arith.constant dense<0.000000e+00> : vector<1x8x128xf32>
    %24 = vector.multi_reduction <add>, %13, %cst_25 [1] : vector<1x1x8x128xf32> to vector<1x8x128xf32>
    %25 = arith.addf %23, %24 : vector<1x8x128xf32>
    %c0_26 = arith.constant 0 : index
    %c0_27 = arith.constant 0 : index
    %c0_28 = arith.constant 0 : index
    %26 = vector.load %arg6[%c0_26, %c0_27, %c0_28] : memref<1x8x128xf32, #tpu.memory_space<vmem>>, vector<1x8x128xf32>
    tpu.vector_store %arg6[%c0_26, %c0_27, %c0_28], %25 {strides = array<i32>} : memref<1x8x128xf32, #tpu.memory_space<vmem>>, vector<1x8x128xf32>,
    return
  }
  func.func @transform_0(%arg0: i32, %arg1: i32) -> (i32, i32, i32) {
    %c0_i32 = arith.constant 0 : i32
    %c0_i32_0 = arith.constant 0 : i32
    return %arg0, %arg1, %c0_i32 : i32, i32, i32
  }
  func.func @transform_1(%arg0: i32, %arg1: i32) -> (i32, i32, i32) {
    %c0_i32 = arith.constant 0 : i32
    %c0_i32_0 = arith.constant 0 : i32
    return %arg0, %arg1, %c0_i32 : i32, i32, i32
  }
  func.func @transform_2(%arg0: i32, %arg1: i32) -> (i32, i32, i32) {
    %c0_i32 = arith.constant 0 : i32
    %c0_i32_0 = arith.constant 0 : i32
    %c0_i32_1 = arith.constant 0 : i32
    return %arg0, %c0_i32, %c0_i32_0 : i32, i32, i32
  }
  func.func @transform_3(%arg0: i32, %arg1: i32) -> (i32, i32, i32) {
    %c0_i32 = arith.constant 0 : i32
    %c0_i32_0 = arith.constant 0 : i32
    %c0_i32_1 = arith.constant 0 : i32
    return %arg0, %c0_i32, %c0_i32_0 : i32, i32, i32
  }
  func.func @transform_4(%arg0: i32, %arg1: i32) -> (i32, i32, i32) {
    %c0_i32 = arith.constant 0 : i32
    %c0_i32_0 = arith.constant 0 : i32
    %c0_i32_1 = arith.constant 0 : i32
    return %arg0, %c0_i32, %c0_i32_0 : i32, i32, i32
  }
}

</mosaic_0001>

<bundles_post_ra>
// kernel: tpu_custom_call.1
= control target key start
LH: loop header
LB: loop body
LE: loop exit
PB: predicated region body
PF: predicated region fallthrough
CT: control target
= control target key end

     0   :  { %s1166_s0 = inlined_call_operand.hbm [shape: f32[2,8,128], index: 0, kind: input, shape index: {}]   ;;  %s1167_s1 = inlined_call_operand.hbm [shape: f32[2,8,128], index: 1, kind: input, shape index: {}]   ;;  %s1168_s2 = inlined_call_operand.hbm [shape: f32[2,8,128], index: 2, kind: output, shape index: {0}]   ;;  %s1169_s3 = inlined_call_operand.hbm [shape: f32[2,8,128], index: 3, kind: output, shape index: {1}]   ;;  %s1170_s4 = inlined_call_operand.hbm [shape: f32[2,8,128], index: 4, kind: output, shape index: {2}]  }
   0x1   :  { %1175 = sst [smem:[#allocation15_spill]] %s1166_s0 }
   0x2   :  { %10 = vsyncpa [#allocation3], 0 }
   0x3   :  { %12 = vsyncpa [#allocation3 + $0x1], 0 }
   0x4   :  { %13 = vsyncpa [#allocation6], 0 }
   0x5   :  { %15 = vsyncpa [#allocation6 + $0x1], 0 }
   0x6   :  { %16 = vsyncpa [#allocation4], 0 }
   0x7   :  { %18 = vsyncpa [#allocation4 + $0x1], 0 }
   0x8   :  { %19 = vsyncpa [#allocation9], 0 }
   0x9   :  { %21 = vsyncpa [#allocation9 + $0x1], 0  ;;  %s866_s15 = smov 0   ;;  %s868_s16 = smov 0  }
   0xa   :  { %s870_s17 = smov 0   ;;  %s872_s18 = smov 0  }
   0xb   :  { %s874_s19 = smov 0   ;;  %s876_s20 = smov 0  }
   0xc LB: > { %s897_s21 = sadd.s32 4294967295, %s834_s20   ;;  %s1171_s22 = sadd.s32 4294967294, %s834_s20   ;;  %s834_s20 = sphi %s876_s20, %s27_s20   ;;  %s830_s19 = sphi %s874_s19, %s1196_s19   ;;  %s826_s18 = sphi %s872_s18, %s1195_s18   ;;  %s822_s17 = sphi %s870_s17, %s1194_s17   ;;  %s818_s16 = sphi %s868_s16, %s1193_s16   ;;  %s814_s15 = sphi %s866_s15, %s1192_s15  }
   0xd   : > { %s39_s23 = sadd.s32 1, %s830_s19  ;;  %s48_s24 = sadd.s32 1, %s822_s17 }
   0xe   : > { %p41_p0 = scmp.ge.s32.totalorder %s39_s23, 2  ;;  %p55_p1 = scmp.ne.s32.totalorder %s822_s17, %s818_s16 }
   0xf   : > { %p56_p2 = scmp.eq.s32.totalorder %s834_s20, 0  ;;  %p61_p3 = scmp.ne.s32.totalorder %s818_s16, %s814_s15 }
  0x10   : > { %s1198_s23 = smov (%p41_p0, %s39_s23), 0  ;;  %p62_p5 = scmp.eq.s32.totalorder %s897_s21, 0 }
  0x11   : > { %p909_p4 = por %p56_p2, %p55_p1  ;;  %s43_s26 = ssub.s32 %s830_s19, %s1198_s23 }
  0x12   : > { %p113_p6 = scmp.eq.s32.totalorder %s897_s21, 1  ;;  %p46_p7 = scmp.eq.s32.totalorder %s43_s26, 0 }
  0x13   : > { %p917_p8 = por %p62_p5, %p61_p3  ;;  %p119_p10 = scmp.eq.s32.totalorder %s1171_s22, 1 }
  0x14   : > { %p921_p9 = por %p113_p6, %p55_p1  ;;  %p575_p13 = scmp.lt.s32.totalorder %s834_s20, 2 }
  0x15   : > { %s1177_s27 = scalar_select %p917_p8, 1, 0 }
  0x16   : > { %s1178_s28 = scalar_select %p921_p9, 1, 0 }
  0x17   : > { %s928_s29 = scalar_select %p46_p7, %s822_s17, %s48_s24  }
  0x18   : > { %p930_p11 = por %p119_p10, %p61_p3  ;;  %s937_s5 = sand.u32 1, %s822_s17  }
  0x19   : > { %s530_s6 = sshll.u32 %s937_s5, 3  ;;  %s531_s7 = sshll.u32 %s830_s19, 7 }
  0x1a   : > { %s1179_s30 = scalar_select %p930_p11, 1, 0 }
  0x1b   : > { %s1180_s0 = sld [smem:[#allocation15_spill]]  ;;  %s195_s11 = scalar_lea.vmem [#allocation2], %s530_s6 }
  0x1c   : > { %s203_s12 = sshll.u32 %s195_s11, 4  ;;  %p954_p0 = pnand %p575_p13, %p909_p4  ;;  %s950_s12 = int_to_ptr.vmem [resolvable:$true] %s203_s12 }
  0x1d   : > { %s192_s14 = scalar_lea.sflag [#allocation3], %s937_s5 }
  0x1e   : > { %p630_p5 = pneg %p954_p0 }
  0x21   : > { %s946_s10 = scalar_lea.hbm %s1180_s0, %s531_s7  ;;  %s633_s25 = scalar_lea.hbm %s1180_s0, 256 }
  0x22   : > { %s628_s24 = scalar_lea.hbm %s946_s10, 128  ;;  %p634_p4 = scmp.lt.u32.totalorder %s946_s10, %s1180_s0 }
  0x23   : > { %p629_p3 = scmp.ne.s32.totalorder %s946_s10, %s628_s24  ;;  %p635_p10 = scmp.lt.u32.totalorder %s633_s25, %s628_s24 }
  0x24   : > { %p637_p12 = scmp.lt.u32.totalorder %s628_s24, %s946_s10 }
  0x25   : > { %p631_p6 = pnand %p630_p5, %p629_p3  ;;  %p636_p13 = por %p635_p10, %p634_p4 }
  0x27   : > { %p632_p7 = pneg %p631_p6  ;;  %p638_p1 = por %p637_p12, %p636_p13 }
  0x29   : > { %p639_p2 = pnand %p638_p1, %p632_p7 }
  0x2b   : > { %642 = shalt.err (!%p639_p2)
}
  0x2c   : > { %s643_s22 = scalar_lea.vmem %s950_s12, 128  ;;  %s836_s26 = smov [#allocation2]  }
  0x2d   : > { %p644_p3 = scmp.ne.s32.totalorder %s950_s12, %s643_s22  ;;  %s648_s8 = sshll.u32 %s836_s26, 4  ;;  %s649_s8 = int_to_ptr.vmem [resolvable:$false] %s648_s8 }
  0x2e   : > { %s650_s9 = scalar_lea.vmem %s649_s8, 256  ;;  %p651_p9 = scmp.lt.s32.totalorder %s950_s12, %s649_s8 }
  0x2f   : > { %p646_p6 = pnand %p644_p3, %p630_p5  ;;  %p652_p4 = scmp.lt.s32.totalorder %s650_s9, %s643_s22 }
  0x31   : > { %p647_p11 = pneg %p646_p6  ;;  %p653_p10 = por %p652_p4, %p651_p9 }
  0x33   : > { %p654_p12 = pnand %p653_p10, %p647_p11 }
  0x35   : > { %657 = shalt.err (!%p654_p12)
}
  0x36   : > { %561 = dma.hbm_to_vmem [thread:$0]  (!%p954_p0), %s946_s10, 128, %s950_s12, %s192_s14  }
  0x37   : > { %p1182_p1 = scmp.lt.s32.totalorder %s834_s20, 3  ;;  %p1183_p2 = scmp.ge.s32.totalorder %s834_s20, 1 }
  0x38   : > { %s999_s11 = scalar_lea.hbm %s1167_s1, %s531_s7  ;;  %s214_s26 = scalar_lea.vmem [#allocation5], %s530_s6 }
  0x39   : > { %p990_p7 = pnand %p1183_p2, %p1182_p1  ;;  %s222_s8 = sshll.u32 %s214_s26, 4  ;;  %s223_s8 = int_to_ptr.vmem [resolvable:$true] %s222_s8 }
  0x3a   : > { %s211_s10 = scalar_lea.sflag [#allocation6], %s937_s5  ;;  %s658_s12 = scalar_lea.hbm %s999_s11, 128 }
  0x3b   : > { %s1184_s24 = scalar_select %p990_p7, 1, 0 }
  0x3c   : > { %p659_p9 = scmp.ne.s32.totalorder %s999_s11, %s658_s12  ;;  %s663_s7 = scalar_lea.hbm %s1167_s1, 256 }
  0x3d   : > { %p664_p3 = scmp.lt.u32.totalorder %s999_s11, %s1167_s1  ;;  %p665_p6 = scmp.lt.u32.totalorder %s663_s7, %s658_s12 }
  0x3e   : > { %p661_p11 = pnand %p659_p9, %p630_p5  ;;  %p667_p10 = scmp.lt.u32.totalorder %s658_s12, %s999_s11 }
  0x3f   : > { %p666_p4 = por %p665_p6, %p664_p3 }
  0x40   : > { %p662_p13 = pneg %p661_p11 }
  0x41   : > { %p668_p12 = por %p667_p10, %p666_p4 }
  0x43   : > { %p669_p1 = pnand %p668_p12, %p662_p13 }
  0x45   : > { %672 = shalt.err (!%p669_p1)
}
  0x46   : > { %s673_s5 = scalar_lea.vmem %s223_s8, 128  ;;  %s837_s6 = smov [#allocation5]  }
  0x47   : > { %p674_p2 = scmp.ne.s32.totalorder %s223_s8, %s673_s5  ;;  %s678_s26 = sshll.u32 %s837_s6, 4  ;;  %s679_s26 = int_to_ptr.vmem [resolvable:$false] %s678_s26 }
  0x48   : > { %s680_s14 = scalar_lea.vmem %s679_s26, 256  ;;  %p681_p8 = scmp.lt.s32.totalorder %s223_s8, %s679_s26 }
  0x49   : > { %p676_p9 = pnand %p674_p2, %p630_p5  ;;  %p682_p7 = scmp.lt.s32.totalorder %s680_s14, %s673_s5 }
  0x4b   : > { %p677_p11 = pneg %p676_p9  ;;  %p683_p3 = por %p682_p7, %p681_p8 }
  0x4d   : > { %p684_p6 = pnand %p683_p3, %p677_p11 }
  0x4f   : > { %687 = shalt.err (!%p684_p6)
}
  0x50   : > { %564 = dma.hbm_to_vmem [thread:$0]  (!%p954_p0), %s999_s11, 128, %s223_s8, %s211_s10  }
  0x51   : > { %p1185_p13 = scmp.ne.s32.totalorder %s1184_s24, 0 }
  0x52   : > { %s1026_s12 = sand.u32 (!%p1185_p13), 1, %s818_s16   ;;  %p1186_p8 = scmp.ne.s32.totalorder (!%p1185_p13), %s1177_s27, 0 }
  0x53   : > { %231 = sbr.rel (%p1185_p13) target bundleno = 171 (0xab), region = 28  ;;  %s1029_s9 = sshll.u32 (!%p1185_p13), %s1026_s12, 3 }
  0x54   : > { %s234_s7 = scalar_lea.sflag (!%p1185_p13), [#allocation3], %s1026_s12  ;;  %s237_s22 = scalar_lea.vmem (!%p1185_p13), [#allocation2], %s1029_s9 }
  0x5a   : > { %797 = dma.done.wait (%p1186_p8), %s234_s7, 128  }
  0x5b   : > { %799 = vsyncadd (%p1186_p8), %s234_s7, 4294967168  ;;  %s243_s13 = scalar_lea.sflag [#allocation6], %s1026_s12  ;;  %s246_s24 = scalar_lea.vmem [#allocation5], %s1029_s9 }
  0x5c   : > { %801 = dma.done.wait (%p1186_p8), %s243_s13, 128  }
  0x5d   : > { %803 = vsyncadd (%p1186_p8), %s243_s13, 4294967168  ;;  %v293_v0 = vld [vmem:[%s237_s22] sm:$0xff]  ;;  %v294_v1 = vld [vmem:[%s246_s24] sm:$0xff]  ;;  %s285_s11 = scalar_lea.vmem [#allocation10], %s1029_s9  ;;  %s317_s8 = sand.u32 1, %s897_s21  }
  0x5e   : > { %v295_v2 = vmul.f32 0.5, %v293_v0  ;;  %311 = vst [vmem:[%s285_s11] sm:$0xff] %v294_v1  ;;  %s362_s10 = sshll.u32 %s285_s11, 4  ;;  %s543_s25 = sshll.u32 %s826_s18, 7  ;;  %s1047_s10 = int_to_ptr.vmem [resolvable:$true] %s362_s10 }
  0x5f   : > { %s278_s5 = scalar_lea.vmem [#allocation8], %s1029_s9  ;;  %s1174_s6 = scalar_lea.vmem [#allocation7], %s1029_s9 }
  0x60   : > { %626 = vtanh.f32 %v295_v2  ;;  %s349_s27 = sshll.u32 %s278_s5, 4  ;;  %s336_s26 = sshll.u32 %s1174_s6, 4  ;;  %s1057_s27 = int_to_ptr.vmem [resolvable:$true] %s349_s27  ;;  %s1069_s26 = int_to_ptr.vmem [resolvable:$true] %s336_s26 }
  0x61   : > { %s1055_s22 = scalar_lea.hbm %s1169_s3, %s543_s25  ;;  %s1062_s18 = scalar_lea.hbm %s1170_s4, %s543_s25 }
  0x62   : > { %s1067_s6 = scalar_lea.hbm %s1168_s2, %s543_s25  ;;  %s1071_s14 = scalar_lea.sflag [#allocation9], %s317_s8 }
  0x63   : > { %s688_s7 = scalar_lea.vmem %s1057_s27, 128  ;;  %p1187_p5 = scmp.ne.s32.totalorder %s1178_s28, 0 }
  0x64   : > { %p689_p0 = scmp.ne.s32.totalorder %s1057_s27, %s688_s7  ;;  %s838_s21 = smov [#allocation8]  }
  0x65   : > { %s692_s13 = sshll.u32 %s838_s21, 4  ;;  %s693_s13 = int_to_ptr.vmem [resolvable:$false] %s692_s13 }
  0x66   : > { %p690_p7 = pnand %p689_p0, %p1187_p5  ;;  %s694_s0 = scalar_lea.vmem %s693_s13, 256 }
  0x67   : > { %p695_p10 = scmp.lt.s32.totalorder %s1057_s27, %s693_s13  ;;  %p696_p12 = scmp.lt.s32.totalorder %s694_s0, %s688_s7 }
  0x68   : > { %p691_p4 = pneg %p690_p7 }
  0x69   : > { %p697_p1 = por %p696_p12, %p695_p10 }
  0x6a   : > { %v627_v3 = vpop.eup %626 }
  0x6b   : > { %v297_v4 = vmul.f32 0.5, %v627_v3  ;;  %p698_p2 = pnand %p697_p1, %p691_p4 }
  0x6d   : > { %v298_v5 = vadd.f32 0.5, %v297_v4 }
  0x6f   : > { %v300_v6 = vmul.f32 %v298_v5, %v294_v1  ;;  %307 = vst [vmem:[%s278_s5] sm:$0xff] %v298_v5 }
  0x70   : > { %701 = shalt.err (!%p698_p2)
}
  0x71   : > { %s702_s8 = scalar_lea.hbm %s1055_s22, 128  ;;  %s706_s24 = scalar_lea.hbm %s1169_s3, 256 }
  0x72   : > { %p703_p9 = scmp.ne.s32.totalorder %s1055_s22, %s702_s8  ;;  %p707_p6 = scmp.lt.u32.totalorder %s1055_s22, %s1169_s3 }
  0x73   : > { %p708_p13 = scmp.lt.u32.totalorder %s706_s24, %s702_s8  ;;  %p710_p0 = scmp.lt.u32.totalorder %s702_s8, %s1055_s22 }
  0x74   : > { %p704_p11 = pnand %p703_p9, %p1187_p5 }
  0x75   : > { %p709_p8 = por %p708_p13, %p707_p6 }
  0x76   : > { %p705_p3 = pneg %p704_p11 }
  0x77   : > { %p711_p7 = por %p710_p0, %p709_p8 }
  0x79   : > { %p712_p4 = pnand %p711_p7, %p705_p3 }
  0x7b   : > { %715 = shalt.err (!%p712_p4)
}
  0x7c   : > { %553 = dma.vmem_to_hbm [thread:$0]  (%p1187_p5), %s1057_s27, 128, %s1055_s22, %s1071_s14  }
  0x7d   : > { %s1188_s0 = scalar_lea.vmem [#allocation7], %s1029_s9  ;;  %s716_s7 = scalar_lea.vmem %s1047_s10, 128 }
  0x7e   : > { %303 = vst [vmem:[%s1188_s0] sm:$0xff] %v300_v6  ;;  %p717_p10 = scmp.ne.s32.totalorder %s1047_s10, %s716_s7  ;;  %s839_s13 = smov [#allocation10]  }
  0x7f   : > { %s720_s8 = sshll.u32 %s839_s13, 4  ;;  %s721_s8 = int_to_ptr.vmem [resolvable:$false] %s720_s8 }
  0x80   : > { %p718_p12 = pnand %p717_p10, %p1187_p5  ;;  %s722_s25 = scalar_lea.vmem %s721_s8, 256 }
  0x81   : > { %p723_p2 = scmp.lt.s32.totalorder %s1047_s10, %s721_s8  ;;  %p724_p9 = scmp.lt.s32.totalorder %s722_s25, %s716_s7 }
  0x82   : > { %p719_p1 = pneg %p718_p12 }
  0x83   : > { %p725_p11 = por %p724_p9, %p723_p2 }
  0x85   : > { %p726_p3 = pnand %p725_p11, %p719_p1 }
  0x87   : > { %729 = shalt.err (!%p726_p3)
}
  0x88   : > { %s730_s9 = scalar_lea.hbm %s1062_s18, 128  ;;  %s734_s5 = scalar_lea.hbm %s1170_s4, 256 }
  0x89   : > { %p731_p6 = scmp.ne.s32.totalorder %s1062_s18, %s730_s9  ;;  %p735_p0 = scmp.lt.u32.totalorder %s1062_s18, %s1170_s4 }
  0x8a   : > { %p736_p7 = scmp.lt.u32.totalorder %s734_s5, %s730_s9  ;;  %p738_p10 = scmp.lt.u32.totalorder %s730_s9, %s1062_s18 }
  0x8b   : > { %p732_p13 = pnand %p731_p6, %p1187_p5 }
  0x8c   : > { %p737_p4 = por %p736_p7, %p735_p0 }
  0x8d   : > { %p733_p8 = pneg %p732_p13 }
  0x8e   : > { %p739_p12 = por %p738_p10, %p737_p4 }
  0x90   : > { %p740_p1 = pnand %p739_p12, %p733_p8 }
  0x92   : > { %743 = shalt.err (!%p740_p1)
}
  0x93   : > { %554 = dma.vmem_to_hbm [thread:$0]  (%p1187_p5), %s1047_s10, 128, %s1062_s18, %s1071_s14  }
  0x94   : > { %s313_s21 = scalar_lea.sflag [#allocation4], %s1026_s12  ;;  %s744_s0 = scalar_lea.vmem %s1069_s26, 128 }
  0x95   : > { %p745_p2 = scmp.ne.s32.totalorder %s1069_s26, %s744_s0  ;;  %s840_s7 = smov [#allocation7]  }
  0x96   : > { %s748_s13 = sshll.u32 %s840_s7, 4  ;;  %s749_s13 = int_to_ptr.vmem [resolvable:$false] %s748_s13 }
  0x97   : > { %p746_p9 = pnand %p745_p2, %p1187_p5  ;;  %s750_s8 = scalar_lea.vmem %s749_s13, 256 }
  0x98   : > { %p751_p3 = scmp.lt.s32.totalorder %s1069_s26, %s749_s13  ;;  %p752_p6 = scmp.lt.s32.totalorder %s750_s8, %s744_s0 }
  0x99   : > { %p747_p11 = pneg %p746_p9 }
  0x9a   : > { %p753_p13 = por %p752_p6, %p751_p3 }
  0x9c   : > { %p754_p8 = pnand %p753_p13, %p747_p11 }
  0x9e   : > { %757 = shalt.err (!%p754_p8)
}
  0x9f   : > { %s758_s12 = scalar_lea.hbm %s1067_s6, 128  ;;  %s762_s14 = scalar_lea.hbm %s1168_s2, 256 }
  0xa0   : > { %p759_p0 = scmp.ne.s32.totalorder %s1067_s6, %s758_s12  ;;  %p763_p10 = scmp.lt.u32.totalorder %s1067_s6, %s1168_s2 }
  0xa1   : > { %p764_p12 = scmp.lt.u32.totalorder %s762_s14, %s758_s12  ;;  %p766_p2 = scmp.lt.u32.totalorder %s758_s12, %s1067_s6 }
  0xa2   : > { %p760_p7 = pnand %p759_p0, %p1187_p5 }
  0xa3   : > { %p765_p1 = por %p764_p12, %p763_p10 }
  0xa4   : > { %p761_p4 = pneg %p760_p7 }
  0xa5   : > { %p767_p9 = por %p766_p2, %p765_p1 }
  0xa7   : > { %p768_p11 = pnand %p767_p9, %p761_p4 }
  0xa9   : > { %771 = shalt.err (!%p768_p11)
}
  0xaa   : > { %552 = dma.vmem_to_hbm [thread:$0]  (%p1187_p5), %s1069_s26, 128, %s1067_s6, %s313_s21  }
  0xab PF: > { %s374_s27 = sand.u32 1, %s814_s15   ;;  %p1189_p3 = scmp.ne.s32.totalorder %s1179_s30, 0 }
  0xac   : > { %p1190_p6 = scmp.ge.s32.totalorder %s834_s20, 2  ;;  %s375_s22 = scalar_lea.sflag [#allocation4], %s374_s27 }
  0xae   : > { %p566_p13 = pnand %p1190_p6, %p1189_p3 }
  0xb0   : > { %805 = dma.done.wait (!%p566_p13), %s375_s22, 128  }
  0xb1   : > { %807 = vsyncadd (!%p566_p13), %s375_s22, 4294967168  ;;  %s1191_s5 = sadd.s32 4294967294, %s834_s20  }
  0xb2   : > { %s383_s24 = sand.u32 1, %s1191_s5  }
  0xb3   : > { %s384_s11 = scalar_lea.sflag [#allocation9], %s383_s24 }
  0xb4   : > { %809 = dma.done.wait (!%p566_p13), %s384_s11, 256  }
  0xb5   : > { %811 = vsyncadd (!%p566_p13), %s384_s11, 4294967040  ;;  %s27_s20 = sadd.s32 1, %s834_s20   ;;  %s1192_s15 = smov %s818_s16 }
  0xb6   : > { %p24_p5 = scmp.ge.s32.totalorder %s27_s20, 4   ;;  %s1193_s16 = smov %s822_s17 }
  0xb7   : > { %s1194_s17 = smov %s928_s29  ;;  %s1195_s18 = smov %s830_s19 }
  0xb8   : > { %s1196_s19 = smov %s1198_s23  ;;  %26 = sbr.rel (!%p24_p5) target bundleno = 12 (0xc), region = 122 }
  0xbf   :  { %398 = vsyncpa [#allocation3], 1 }
  0xc0   :  { %400 = vsyncpa [#allocation3 + $0x1], 1 }
  0xc1   :  { %401 = vsyncpa [#allocation6], 1 }
  0xc2   :  { %403 = vsyncpa [#allocation6 + $0x1], 1 }
  0xc3   :  { %404 = vsyncpa [#allocation4], 1 }
  0xc4   :  { %406 = vsyncpa [#allocation4 + $0x1], 1 }
  0xc5   :  { %407 = vsyncpa [#allocation9], 1 }
  0xc6   :  { %409 = vsyncpa [#allocation9 + $0x1], 1 }

</bundles_post_ra>
